<compile_context>
chip_gen: v6e
topology: v6e:2x2x1
jax: 0.10.0
libtpu: 0.0.40
codegen_flags: <defaults>
</compile_context>

<pallas_src>
import jax
import jax.numpy as jnp
import numpy as np
from jax.experimental import pallas as pl
from jax.experimental.pallas import tpu as pltpu


def _self_output_kernel(theta_ref, out_ref):
    """forward(): return theta  ->  a straight VMEM copy of the parameter row."""
    out_ref[...] = theta_ref[...]


def self_output_forward(theta, input=None, *, use_pallas=True):
    """JAX wrapper mirroring SelfOutputNet.forward(input=None) -> theta.

    use_pallas=False is the recommended production path (pure identity, no
    custom-call overhead).  use_pallas=True runs the Pallas kernel with the
    input buffer aliased to the output so there is no writeback DMA.
    """
    del input  # the torch module ignores its input

    if not use_pallas:
        # Strictly fastest on v5e/v6e/v7x: an identity fuses/aliases to nothing.
        return jnp.asarray(theta)

    n = theta.shape[0]
    theta_row = theta.reshape(1, n)  # lane-dense (1, N) row for TPU layout

    itemsize = jnp.dtype(theta.dtype).itemsize
    out = pl.pallas_call(
        _self_output_kernel,
        out_shape=jax.ShapeDtypeStruct((1, n), theta.dtype),
        # No grid: whole array resident in VMEM, single block, no index_map cost.
        in_specs=[pl.BlockSpec(memory_space=pltpu.MemorySpace.VMEM)],
        out_specs=pl.BlockSpec(memory_space=pltpu.MemorySpace.VMEM),
        # Alias input 0 -> output 0: no separate output HBM buffer, no
        # writeback DMA for the copy.
        input_output_aliases={0: 0},
        cost_estimate=pl.CostEstimate(
            flops=0, transcendentals=0, bytes_accessed=int(n * itemsize)),
    )(theta_row)
    return out.reshape(-1)  # == returning self.theta (shape (num_states,))


if __name__ == "__main__":
    # Shapes implied by the module: theta has hp.num_states entries.
    # For the (non-open-source) IPD: start state + {CC, CD, DC, DD} -> 5 states.
    num_states = 5

    key = jax.random.PRNGKey(0)
    # The module initializes theta to zeros; use small random values here (as
    # after a few optimizer steps) so the passthrough is actually verified.
    theta = 0.1 * jax.random.normal(key, (num_states,), jnp.float32)

    # Kernel path (aliased input/output).
    out = self_output_forward(theta, use_pallas=True)
    out = jax.block_until_ready(out)
    assert out.shape == (num_states,), out.shape
    np.testing.assert_allclose(np.asarray(out), np.asarray(theta), rtol=0, atol=0)

    # Recommended no-kernel path (pure identity) — verify it matches too.
    out_fast = jax.block_until_ready(self_output_forward(theta, use_pallas=False))
    np.testing.assert_allclose(np.asarray(out_fast), np.asarray(theta), rtol=0, atol=0)

    print("KERNEL_OK")

    # TODO(synk): hp.optim_algo / self.optimizer in __init__ is training state
    # (parameter updates), not part of forward, so it is not translated here.
</pallas_src>

<mosaic_0001>
module attributes {stable_mosaic.version = 11 : i64} {
  func.func @_self_output_kernel(%arg0: memref<1x5xf32, #tpu.memory_space<vmem>>, %arg1: memref<1x5xf32, #tpu.memory_space<vmem>>) attributes {dimension_semantics = [], scalar_prefetch = 0 : i64, scratch_operands = 0 : i64, tpu.core_type = #tpu.core_type<tc>} {
    %c0 = arith.constant 0 : index
    %c0_0 = arith.constant 0 : index
    %0 = vector.load %arg0[%c0, %c0_0] : memref<1x5xf32, #tpu.memory_space<vmem>>, vector<1x5xf32>
    %c0_1 = arith.constant 0 : index
    %c0_2 = arith.constant 0 : index
    %1 = vector.load %arg1[%c0_1, %c0_2] : memref<1x5xf32, #tpu.memory_space<vmem>>, vector<1x5xf32>
    tpu.vector_store %arg1[%c0_1, %c0_2], %0 {strides = array<i32>} : memref<1x5xf32, #tpu.memory_space<vmem>>, vector<1x5xf32>,
    return
  }
}

</mosaic_0001>

<bundles_post_ra>
// kernel: tpu_custom_call.1
= control target key start
LH: loop header
LB: loop body
LE: loop exit
PB: predicated region body
PF: predicated region fallthrough
CT: control target
= control target key end

     0   :  { %6 = vsyncpa [#allocation3], 0  ;;  %s103_s0 = inlined_call_operand.hbm [shape: f32[1,5], index: 0, kind: input, shape index: {}, may-alias: {0,1}]   ;;  %s104_s1 = inlined_call_operand.hbm [shape: f32[1,5], index: 1, kind: output, shape index: {}, may-alias: {0,1}]  }
   0x1   :  { %7 = vsyncpa [#allocation4], 0  ;;  %s85_s6 = smov [#allocation2]  }
   0x2   :  { %s14_s7 = sshll.u32 %s85_s6, 4  ;;  %s15_s7 = int_to_ptr.vmem [resolvable:$true] %s14_s7 }
   0x3   :  { %s49_s8 = scalar_lea.vmem %s15_s7, 16  ;;  %s53_s9 = scalar_lea.vmem %s15_s7, 32 }
   0x4   :  { %p50_p0 = scmp.ne.s32.totalorder %s15_s7, %s49_s8  ;;  %p54_p1 = scmp.lt.s32.totalorder %s15_s7, %s15_s7 }
   0x5   :  { %p55_p2 = scmp.lt.s32.totalorder %s53_s9, %s49_s8 }
   0x7   :  { %p56_p3 = por %p55_p2, %p54_p1 }
   0x9   :  { %p57_p4 = pnand %p56_p3, %p50_p0 }
   0xb   :  { %60 = shalt.err (!%p57_p4)
}
   0xc   :  { %17 = dma.hbm_to_vmem [thread:$0]  %s103_s0, 16, %s15_s7, [#allocation3]  }
   0xd   :  { %81 = dma.done.wait [#allocation3], 16  }
   0xe   :  { %82 = vsyncadd [#allocation3], 4294967280  ;;  %s86_s12 = smov [#allocation5]   ;;  %vm22_vm0 = vcmask 32768   ;;  %v21_v0 = vld [vmem:[#allocation2] sm:$0x1] }
   0xf   :  { %s30_s13 = sshll.u32 %s86_s12, 4  ;;  %23 = vst.msk [vmem:[#allocation5] sm:$0x1] %vm22_vm0, %v21_v0  ;;  %s31_s13 = int_to_ptr.vmem [resolvable:$true] %s30_s13 }
  0x10   :  { %s61_s14 = scalar_lea.vmem %s31_s13, 16  ;;  %s65_s15 = scalar_lea.vmem %s31_s13, 32 }
  0x11   :  { %p62_p5 = scmp.ne.s32.totalorder %s31_s13, %s61_s14  ;;  %p66_p6 = scmp.lt.s32.totalorder %s31_s13, %s31_s13 }
  0x12   :  { %p67_p7 = scmp.lt.s32.totalorder %s65_s15, %s61_s14 }
  0x14   :  { %p68_p8 = por %p67_p7, %p66_p6 }
  0x16   :  { %p69_p9 = pnand %p68_p8, %p62_p5 }
  0x18   :  { %72 = shalt.err (!%p69_p9)
}
  0x19   :  { %33 = dma.vmem_to_hbm [thread:$0]  %s31_s13, 16, %s104_s1, [#allocation4]  }
  0x1a   :  { %83 = dma.done.wait [#allocation4], 16  }
  0x1b   :  { %84 = vsyncadd [#allocation4], 4294967280 }
  0x1c   :  { %37 = vsyncpa [#allocation3], 1 }
  0x1d   :  { %38 = vsyncpa [#allocation4], 1 }

</bundles_post_ra>
